<compile_context>
chip_gen: v7x
topology: tpu7x:2x2x1
jax: 0.10.0
libtpu: 0.0.40
codegen_flags: <defaults>
</compile_context>

<pallas_src>
import math
import functools

import numpy as np
import jax
import jax.numpy as jnp
from jax.experimental import pallas as pl
from jax.experimental.pallas import tpu as pltpu


OUT_PAD = 128        # lane-dense output width; wrapper slices [:, :output_dim]
LN_EPS = 1e-6

# Row layout of the packed constants block (shape (8, max(E, OUT_PAD))).
_ROW_BA, _ROW_BB, _ROW_BC, _ROW_GW, _ROW_BPROJ, _ROW_G = 0, 1, 2, 3, 4, 5


# ----------------------------- Pallas kernel --------------------------------

def actor_kernel(x_ref, wa_ref, wb_ref, wc_ref, wproj_ref, const_ref, out_ref,
                 *, batch, seq, embed_dim):
    E = embed_dim
    ba = const_ref[_ROW_BA:_ROW_BA + 1, :E]          # (1, E)
    bb = const_ref[_ROW_BB:_ROW_BB + 1, :E]
    bc = const_ref[_ROW_BC:_ROW_BC + 1, :E]
    gw = const_ref[_ROW_GW:_ROW_GW + 1, :E]          # gamma * w_dec
    bproj = const_ref[_ROW_BPROJ:_ROW_BPROJ + 1, :OUT_PAD]
    g_sum = const_ref[_ROW_G:_ROW_G + 1, 0:1]        # scalar sum(gamma * w_dec)

    # fused encoder_layer + blocks[0].fc1  (bf16 operands, f32 MXU accumulate)
    x = x_ref[...].astype(jnp.bfloat16)
    z = jnp.tanh(jnp.dot(x, wa_ref[...],
                         preferred_element_type=jnp.float32) + ba)
    # fused blocks[0].fc2 + blocks[1].fc1
    z = jnp.tanh(jnp.dot(z.astype(jnp.bfloat16), wb_ref[...],
                         preferred_element_type=jnp.float32) + bb)
    # blocks[1].fc2
    h = jnp.dot(z.astype(jnp.bfloat16), wc_ref[...],
                preferred_element_type=jnp.float32) + bc          # (B*S, E) f32

    # LayerNorm(eps=1e-6) stats + decoder reduce, algebraically folded:
    #   d = (h . gw - mean * sum(gw)) * rsqrt(var + eps)
    # gamma/beta/b_dec were folded into gw / bproj on the host; `hs` is never
    # materialized.  Reshape is a layout-free split of the sublane dim.
    h3 = h.reshape(batch, seq, E)                                  # (B, S, E)
    mean = jnp.mean(h3, axis=-1, keepdims=True)                    # (B, S, 1)
    var = jnp.mean(jnp.square(h3 - mean), axis=-1, keepdims=True)
    hg = jnp.sum(h3 * gw, axis=-1, keepdims=True)
    d = (hg - mean * g_sum) * jax.lax.rsqrt(var + LN_EPS)          # (B, S, 1)

    # proj (Linear(seq, out)) for all batches: broadcast-multiply against the
    # single (S, OUT_PAD) weight + sublane reduce -> one lane-dense store.
    out_ref[...] = jnp.sum(d * wproj_ref[...], axis=1) + bproj     # (B, OUT_PAD)


# ------------------------- parameter construction ---------------------------

def xavier_uniform(key, fan_in, fan_out, shape):
    bound = math.sqrt(6.0 / (fan_in + fan_out))
    return jax.random.uniform(key, shape, jnp.float32, -bound, bound)


def init_actor_params(key, seq, feat, embed_dim, output_dim):
    ks = jax.random.split(key, 8)
    p = {}
    # encoder_layer: Linear(feat, embed_dim)   (weights stored transposed: (in, out))
    p["w_enc"] = xavier_uniform(ks[0], feat, embed_dim, (feat, embed_dim))
    p["b_enc"] = jnp.zeros((1, embed_dim), jnp.float32)
    # two Mlp blocks: Linear(E,E) -> Tanh -> Linear(E,E)
    for i in range(2):
        p[f"w1_{i}"] = xavier_uniform(ks[1 + 2 * i], embed_dim, embed_dim,
                                      (embed_dim, embed_dim))
        p[f"b1_{i}"] = jnp.zeros((1, embed_dim), jnp.float32)
        p[f"w2_{i}"] = xavier_uniform(ks[2 + 2 * i], embed_dim, embed_dim,
                                      (embed_dim, embed_dim))
        p[f"b2_{i}"] = jnp.zeros((1, embed_dim), jnp.float32)
    # LayerNorm
    p["gamma"] = jnp.ones((1, embed_dim), jnp.float32)
    p["beta"] = jnp.zeros((1, embed_dim), jnp.float32)
    # decoder_layer: Linear(embed_dim, 1)  (stored as a single row for lane reduce)
    p["w_dec"] = xavier_uniform(ks[5], embed_dim, 1, (1, embed_dim))
    p["b_dec"] = jnp.zeros((1, 1), jnp.float32)
    # proj: Linear(seq, output_dim)
    p["w_projT"] = xavier_uniform(ks[6], seq, output_dim, (seq, output_dim))
    p["b_proj"] = jnp.zeros((1, output_dim), jnp.float32)
    return p


def fuse_actor_params(p, seq, output_dim):
    """One-time offline fusion (f32); cast big matmul weights to bf16.

    Note: nothing here depends on the batch size anymore.
    """
    assert output_dim <= OUT_PAD, "output_dim must fit in the 128-lane padded output"
    E = p["w1_0"].shape[0]

    wa = p["w_enc"] @ p["w1_0"]                              # (F, E)
    ba = p["b_enc"] @ p["w1_0"] + p["b1_0"]                  # (1, E)
    wb = p["w2_0"] @ p["w1_1"]                               # (E, E)
    bb = p["b2_0"] @ p["w1_1"] + p["b1_1"]                   # (1, E)
    wc = p["w2_1"]                                           # (E, E)
    bc = p["b2_1"]                                           # (1, E)

    # Fold LayerNorm affine + decoder bias into the decoder reduce / proj bias.
    gw = p["gamma"] * p["w_dec"]                             # (1, E)
    c = jnp.sum(p["beta"] * p["w_dec"]) + p["b_dec"][0, 0]   # scalar

    # Lane-dense proj weight (S, OUT_PAD); fold the constant `c` into the bias.
    wproj = jnp.zeros((seq, OUT_PAD), jnp.float32).at[:, :output_dim].set(p["w_projT"])
    bproj = jnp.zeros((1, OUT_PAD), jnp.float32).at[:, :output_dim].set(p["b_proj"])
    bproj_eff = bproj + c * jnp.sum(wproj, axis=0, keepdims=True)

    # Pack all small row constants (+ scalar G) into one (8, W) f32 block:
    # a single DMA / in_spec instead of five.
    W = max(E, OUT_PAD)
    const = jnp.zeros((8, W), jnp.float32)
    const = const.at[_ROW_BA, :E].set(ba[0])
    const = const.at[_ROW_BB, :E].set(bb[0])
    const = const.at[_ROW_BC, :E].set(bc[0])
    const = const.at[_ROW_GW, :E].set(gw[0])
    const = const.at[_ROW_BPROJ, :OUT_PAD].set(bproj_eff[0])
    const = const.at[_ROW_G, 0].set(jnp.sum(gw))

    # NOTE: if feat/embed_dim grow much larger, consider keeping wa/wb in f32
    # (fused products compound bf16 rounding); DMA cost is negligible here.
    return dict(
        wa=wa.astype(jnp.bfloat16),
        wb=wb.astype(jnp.bfloat16),
        wc=wc.astype(jnp.bfloat16),
        wproj=wproj,
        const=const,
    )


# ------------------------------- wrapper -------------------------------------

def actor_forward(x, fp, output_dim):
    B, S, F = x.shape
    assert output_dim <= OUT_PAD
    E = fp["wa"].shape[1]
    x2 = x.reshape(B * S, F)                 # glue: flatten batch*seq in plain JAX

    kernel = functools.partial(actor_kernel, batch=B, seq=S, embed_dim=E)
    vmem = pl.BlockSpec(memory_space=pltpu.MemorySpace.VMEM)
    out = pl.pallas_call(
        kernel,
        out_shape=jax.ShapeDtypeStruct((B, OUT_PAD), jnp.float32),
        in_specs=[vmem] * 6,
        out_specs=vmem,
    )(x2, fp["wa"], fp["wb"], fp["wc"], fp["wproj"], fp["const"])
    return out[:, :output_dim]
    # TODO(synk): if B*S grows to thousands of rows, switch to a row-tiled
    # parallel grid (TILE_M ~ 256-512) so activations stay bounded in VMEM
    # (matters most on v7x: 64 MiB VMEM, 2 TensorCores).


# ------------------------------- reference ----------------------------------

def actor_reference(x, p):
    h = jnp.matmul(x, p["w_enc"]) + p["b_enc"]
    for i in range(2):
        z = jnp.tanh(jnp.matmul(h, p[f"w1_{i}"]) + p[f"b1_{i}"])
        h = jnp.matmul(z, p[f"w2_{i}"]) + p[f"b2_{i}"]
    mean = h.mean(-1, keepdims=True)
    var = ((h - mean) ** 2).mean(-1, keepdims=True)
    h = (h - mean) / jnp.sqrt(var + LN_EPS) * p["gamma"] + p["beta"]
    d = (h * p["w_dec"]).sum(-1) + p["b_dec"][0, 0]          # (B, S)
    out = jnp.matmul(d, p["w_projT"]) + p["b_proj"]          # (B, OUT)
    return out


# --------------------------------- main --------------------------------------

if __name__ == "__main__":
    # Small shapes consistent with Actor(input_size=(seq, feat), embed_dim=E, depth=2)
    B, SEQ, FEAT, EMBED, OUT = 2, 8, 128, 128, 3

    key = jax.random.PRNGKey(0)
    kx, kp = jax.random.split(key)
    x = jax.random.normal(kx, (B, SEQ, FEAT), jnp.float32)
    params = init_actor_params(kp, SEQ, FEAT, EMBED, OUT)
    fused = fuse_actor_params(params, SEQ, OUT)

    out = jax.block_until_ready(actor_forward(x, fused, OUT))
    ref = jax.block_until_ready(actor_reference(x, params))

    # Tolerance covers bf16 weight storage + MXU f32 accumulation differences.
    np.testing.assert_allclose(np.asarray(out), np.asarray(ref), atol=5e-2, rtol=5e-2)

    assert out.shape == (B, OUT)
    print("KERNEL_OK")
</pallas_src>

<mosaic_0001>
module attributes {stable_mosaic.version = 11 : i64} {
  func.func @actor_kernel(%arg0: memref<16x128xf32, #tpu.memory_space<vmem>>, %arg1: memref<128x128xbf16, #tpu.memory_space<vmem>>, %arg2: memref<128x128xbf16, #tpu.memory_space<vmem>>, %arg3: memref<128x128xbf16, #tpu.memory_space<vmem>>, %arg4: memref<8x128xf32, #tpu.memory_space<vmem>>, %arg5: memref<8x128xf32, #tpu.memory_space<vmem>>, %arg6: memref<2x128xf32, #tpu.memory_space<vmem>>) attributes {dimension_semantics = [], scalar_prefetch = 0 : i64, scratch_operands = 0 : i64, tpu.core_type = #tpu.core_type<tc>} {
    %c0 = arith.constant 0 : index
    %c0_0 = arith.constant 0 : index
    %0 = vector.load %arg5[%c0, %c0_0] : memref<8x128xf32, #tpu.memory_space<vmem>>, vector<1x128xf32>
    %c1 = arith.constant 1 : index
    %c0_1 = arith.constant 0 : index
    %1 = vector.load %arg5[%c1, %c0_1] : memref<8x128xf32, #tpu.memory_space<vmem>>, vector<1x128xf32>
    %c2 = arith.constant 2 : index
    %c0_2 = arith.constant 0 : index
    %2 = vector.load %arg5[%c2, %c0_2] : memref<8x128xf32, #tpu.memory_space<vmem>>, vector<1x128xf32>
    %c3 = arith.constant 3 : index
    %c0_3 = arith.constant 0 : index
    %3 = vector.load %arg5[%c3, %c0_3] : memref<8x128xf32, #tpu.memory_space<vmem>>, vector<1x128xf32>
    %c4 = arith.constant 4 : index
    %c0_4 = arith.constant 0 : index
    %4 = vector.load %arg5[%c4, %c0_4] : memref<8x128xf32, #tpu.memory_space<vmem>>, vector<1x128xf32>
    %c5 = arith.constant 5 : index
    %c0_5 = arith.constant 0 : index
    %5 = vector.load %arg5[%c5, %c0_5] : memref<8x128xf32, #tpu.memory_space<vmem>>, vector<1x1xf32>
    %c0_6 = arith.constant 0 : index
    %c0_7 = arith.constant 0 : index
    %6 = vector.load %arg0[%c0_6, %c0_7] : memref<16x128xf32, #tpu.memory_space<vmem>>, vector<16x128xf32>
    %7 = arith.truncf %6 : vector<16x128xf32> to vector<16x128xbf16>
    %c0_8 = arith.constant 0 : index
    %c0_9 = arith.constant 0 : index
    %8 = vector.load %arg1[%c0_8, %c0_9] : memref<128x128xbf16, #tpu.memory_space<vmem>>, vector<128x128xbf16>
    %cst = arith.constant dense<0.000000e+00> : vector<16x128xf32>
    %9 = tpu.matmul %7, %8, %cst {dimension_numbers = #tpu.dot_dimension_numbers<[1], [0], [0], [1], [0, 0, 1, 1], [], []>} : vector<16x128xbf16>, vector<128x128xbf16>, vector<16x128xf32> -> vector<16x128xf32>
    %10 = vector.broadcast %0 : vector<1x128xf32> to vector<16x128xf32>
    %11 = arith.addf %9, %10 : vector<16x128xf32>
    %12 = math.tanh %11 : vector<16x128xf32>
    %13 = arith.truncf %12 : vector<16x128xf32> to vector<16x128xbf16>
    %c0_10 = arith.constant 0 : index
    %c0_11 = arith.constant 0 : index
    %14 = vector.load %arg2[%c0_10, %c0_11] : memref<128x128xbf16, #tpu.memory_space<vmem>>, vector<128x128xbf16>
    %cst_12 = arith.constant dense<0.000000e+00> : vector<16x128xf32>
    %15 = tpu.matmul %13, %14, %cst_12 {dimension_numbers = #tpu.dot_dimension_numbers<[1], [0], [0], [1], [0, 0, 1, 1], [], []>} : vector<16x128xbf16>, vector<128x128xbf16>, vector<16x128xf32> -> vector<16x128xf32>
    %16 = vector.broadcast %1 : vector<1x128xf32> to vector<16x128xf32>
    %17 = arith.addf %15, %16 : vector<16x128xf32>
    %18 = math.tanh %17 : vector<16x128xf32>
    %19 = arith.truncf %18 : vector<16x128xf32> to vector<16x128xbf16>
    %c0_13 = arith.constant 0 : index
    %c0_14 = arith.constant 0 : index
    %20 = vector.load %arg3[%c0_13, %c0_14] : memref<128x128xbf16, #tpu.memory_space<vmem>>, vector<128x128xbf16>
    %cst_15 = arith.constant dense<0.000000e+00> : vector<16x128xf32>
    %21 = tpu.matmul %19, %20, %cst_15 {dimension_numbers = #tpu.dot_dimension_numbers<[1], [0], [0], [1], [0, 0, 1, 1], [], []>} : vector<16x128xbf16>, vector<128x128xbf16>, vector<16x128xf32> -> vector<16x128xf32>
    %22 = vector.broadcast %2 : vector<1x128xf32> to vector<16x128xf32>
    %23 = arith.addf %21, %22 : vector<16x128xf32>
    %24 = vector.shape_cast %23 : vector<16x128xf32> to vector<2x8x128xf32>
    %cst_16 = arith.constant dense<0.000000e+00> : vector<2x8xf32>
    %25 = vector.multi_reduction <add>, %24, %cst_16 [2] : vector<2x8x128xf32> to vector<2x8xf32>
    %26 = vector.shape_cast %25 : vector<2x8xf32> to vector<2x8x1xf32>
    %cst_17 = arith.constant 1.280000e+02 : f32
    %27 = vector.broadcast %cst_17 : f32 to vector<2x8x1xf32>
    %28 = arith.divf %26, %27 : vector<2x8x1xf32>
    %29 = vector.broadcast %28 : vector<2x8x1xf32> to vector<2x8x128xf32>
    %30 = arith.subf %24, %29 : vector<2x8x128xf32>
    %31 = arith.mulf %30, %30 : vector<2x8x128xf32>
    %cst_18 = arith.constant dense<0.000000e+00> : vector<2x8xf32>
    %32 = vector.multi_reduction <add>, %31, %cst_18 [2] : vector<2x8x128xf32> to vector<2x8xf32>
    %33 = vector.shape_cast %32 : vector<2x8xf32> to vector<2x8x1xf32>
    %cst_19 = arith.constant 1.280000e+02 : f32
    %34 = vector.broadcast %cst_19 : f32 to vector<2x8x1xf32>
    %35 = arith.divf %33, %34 : vector<2x8x1xf32>
    %36 = vector.shape_cast %3 : vector<1x128xf32> to vector<1x1x128xf32>
    %37 = vector.broadcast %36 : vector<1x1x128xf32> to vector<2x8x128xf32>
    %38 = arith.mulf %24, %37 : vector<2x8x128xf32>
    %cst_20 = arith.constant dense<0.000000e+00> : vector<2x8xf32>
    %39 = vector.multi_reduction <add>, %38, %cst_20 [2] : vector<2x8x128xf32> to vector<2x8xf32>
    %40 = vector.shape_cast %39 : vector<2x8xf32> to vector<2x8x1xf32>
    %41 = vector.shape_cast %5 : vector<1x1xf32> to vector<1x1x1xf32>
    %42 = vector.broadcast %41 : vector<1x1x1xf32> to vector<2x8x1xf32>
    %43 = arith.mulf %28, %42 : vector<2x8x1xf32>
    %44 = arith.subf %40, %43 : vector<2x8x1xf32>
    %cst_21 = arith.constant 9.99999997E-7 : f32
    %45 = vector.broadcast %cst_21 : f32 to vector<2x8x1xf32>
    %46 = arith.addf %35, %45 : vector<2x8x1xf32>
    %47 = math.rsqrt %46 : vector<2x8x1xf32>
    %48 = arith.mulf %44, %47 : vector<2x8x1xf32>
    %c0_22 = arith.constant 0 : index
    %c0_23 = arith.constant 0 : index
    %49 = vector.load %arg4[%c0_22, %c0_23] : memref<8x128xf32, #tpu.memory_space<vmem>>, vector<8x128xf32>
    %50 = vector.shape_cast %49 : vector<8x128xf32> to vector<1x8x128xf32>
    %51 = vector.broadcast %48 : vector<2x8x1xf32> to vector<2x8x128xf32>
    %52 = vector.broadcast %50 : vector<1x8x128xf32> to vector<2x8x128xf32>
    %53 = arith.mulf %51, %52 : vector<2x8x128xf32>
    %cst_24 = arith.constant dense<0.000000e+00> : vector<2x128xf32>
    %54 = vector.multi_reduction <add>, %53, %cst_24 [1] : vector<2x8x128xf32> to vector<2x128xf32>
    %55 = vector.broadcast %4 : vector<1x128xf32> to vector<2x128xf32>
    %56 = arith.addf %54, %55 : vector<2x128xf32>
    %c0_25 = arith.constant 0 : index
    %c0_26 = arith.constant 0 : index
    %57 = vector.load %arg6[%c0_25, %c0_26] : memref<2x128xf32, #tpu.memory_space<vmem>>, vector<2x128xf32>
    tpu.vector_store %arg6[%c0_25, %c0_26], %56 {strides = array<i32>} : memref<2x128xf32, #tpu.memory_space<vmem>>, vector<2x128xf32>,
    return
  }
}

</mosaic_0001>

<bundles_post_ra>
// kernel: tpu_custom_call.1
= control target key start
LH: loop header
LB: loop body
LE: loop exit
PB: predicated region body
PF: predicated region fallthrough
CT: control target
= control target key end

     0   :  { %11 = vsyncpa [#allocation3], 0  ;;  %s977_s0 = inlined_call_operand.hbm [shape: f32[16,128], index: 0, kind: input, shape index: {}]   ;;  %s978_s1 = inlined_call_operand.hbm [shape: bf16[128,128], index: 1, kind: input, shape index: {}]   ;;  %s979_s2 = inlined_call_operand.hbm [shape: bf16[128,128], index: 2, kind: input, shape index: {}]   ;;  %s980_s3 = inlined_call_operand.hbm [shape: bf16[128,128], index: 3, kind: input, shape index: {}]   ;;  %s981_s4 = inlined_call_operand.vmem [shape: f32[8,128], index: 4, kind: input, shape index: {}]   ;;  %s982_s5 = inlined_call_operand.vmem [shape: f32[8,128], index: 5, kind: input, shape index: {}]   ;;  %s983_s6 = inlined_call_operand.hbm [shape: f32[2,128], index: 6, kind: output, shape index: {}]  }
   0x1   :  { %12 = vsyncpa [#allocation6], 0 }
   0x2   :  { %13 = vsyncpa [#allocation9], 0 }
   0x3   :  { %14 = vsyncpa [#allocation4], 0  ;;  %s803_s21 = smov [#allocation5]   ;;  %s685_s25 = scalar_lea.hbm %s978_s1, 1024 }
   0x4   :  { %s32_s22 = sshll.u32 %s803_s21, 4  ;;  %p686_p0 = scmp.ne.s32.totalorder %s978_s1, %s685_s25  ;;  %s33_s22 = int_to_ptr.vmem [resolvable:$true] %s32_s22 }
   0x5   :  { %p689_p1 = scmp.lt.u32.totalorder %s685_s25, %s978_s1 }
   0x7   :  { %p691_p2 = pnand %p689_p1, %p686_p0 }
   0x9   :  { %694 = shalt.err (!%p691_p2)
}
   0xa   :  { %s695_s30 = scalar_lea.vmem %s33_s22, 1024  ;;  %p700_p4 = scmp.lt.s32.totalorder %s33_s22, %s33_s22 }
   0xb   :  { %p696_p3 = scmp.ne.s32.totalorder %s33_s22, %s695_s30  ;;  %p701_p5 = scmp.lt.s32.totalorder %s695_s30, %s695_s30 }
   0xd   :  { %p702_p6 = por %p701_p5, %p700_p4 }
   0xf   :  { %p703_p7 = pnand %p702_p6, %p696_p3 }
  0x11   :  { %706 = shalt.err (!%p703_p7)
}
  0x12   :  { %s804_s7 = smov 64   ;;  %s805_s8 = smov 4  }
  0x13   :  { %38 = dma.hbm_to_vmem [thread:$0]  %s978_s1, 1024, %s33_s22, [#allocation6], %s804_s7, %s804_s7, %s805_s8  }
  0x14   :  { %s806_s11 = smov [#allocation2]   ;;  %s707_s15 = scalar_lea.hbm %s977_s0, 256 }
  0x15   :  { %s20_s12 = sshll.u32 %s806_s11, 4  ;;  %p708_p8 = scmp.ne.s32.totalorder %s977_s0, %s707_s15  ;;  %s21_s12 = int_to_ptr.vmem [resolvable:$true] %s20_s12 }
  0x16   :  { %p711_p9 = scmp.lt.u32.totalorder %s707_s15, %s977_s0 }
  0x18   :  { %p713_p10 = pnand %p711_p9, %p708_p8 }
  0x1a   :  { %716 = shalt.err (!%p713_p10)
}
  0x1b   :  { %s717_s20 = scalar_lea.vmem %s21_s12, 256  ;;  %p722_p12 = scmp.lt.s32.totalorder %s21_s12, %s21_s12 }
  0x1c   :  { %p718_p11 = scmp.ne.s32.totalorder %s21_s12, %s717_s20  ;;  %p723_p13 = scmp.lt.s32.totalorder %s717_s20, %s717_s20 }
  0x1e   :  { %p724_p0 = por %p723_p13, %p722_p12 }
  0x20   :  { %p725_p1 = pnand %p724_p0, %p718_p11 }
  0x22   :  { %728 = shalt.err (!%p725_p1)
}
  0x23   :  { %s807_s1 = smov 128   ;;  %s808_s21 = smov 8  }
  0x24   :  { %26 = dma.hbm_to_vmem [thread:$0]  %s977_s0, 256, %s21_s12, [#allocation3], %s807_s1, %s807_s1, %s808_s21  }
  0x25   :  { %s809_s24 = smov [#allocation7]   ;;  %s810_s26 = smov [#allocation8]  }
  0x26   :  { %s44_s25 = sshll.u32 %s809_s24, 4  ;;  %s56_s27 = sshll.u32 %s810_s26, 4  ;;  %s45_s25 = int_to_ptr.vmem [resolvable:$true] %s44_s25  ;;  %s877_s27 = int_to_ptr.vmem [resolvable:$true] %s56_s27 }
  0x27   :  { %s729_s30 = scalar_lea.hbm %s979_s2, 1024 }
  0x28   :  { %p730_p2 = scmp.ne.s32.totalorder %s979_s2, %s729_s30  ;;  %p733_p3 = scmp.lt.u32.totalorder %s729_s30, %s979_s2 }
  0x2a   :  { %p735_p4 = pnand %p733_p3, %p730_p2 }
  0x2c   :  { %738 = shalt.err (!%p735_p4)
}
  0x2d   :  { %s739_s0 = scalar_lea.vmem %s45_s25, 1024  ;;  %p744_p6 = scmp.lt.s32.totalorder %s45_s25, %s45_s25 }
  0x2e   :  { %p740_p5 = scmp.ne.s32.totalorder %s45_s25, %s739_s0  ;;  %p745_p7 = scmp.lt.s32.totalorder %s739_s0, %s739_s0 }
  0x30   :  { %p746_p8 = por %p745_p7, %p744_p6 }
  0x32   :  { %p747_p9 = pnand %p746_p8, %p740_p5 }
  0x34   :  { %750 = shalt.err (!%p747_p9)
}
  0x35   :  { %50 = dma.hbm_to_vmem [thread:$0]  %s979_s2, 1024, %s45_s25, [#allocation6], %s804_s7, %s804_s7, %s805_s8  }
  0x36   :  { %s751_s17 = scalar_lea.hbm %s980_s3, 1024 }
  0x37   :  { %p752_p10 = scmp.ne.s32.totalorder %s980_s3, %s751_s17  ;;  %p755_p11 = scmp.lt.u32.totalorder %s751_s17, %s980_s3 }
  0x39   :  { %p757_p12 = pnand %p755_p11, %p752_p10 }
  0x3b   :  { %760 = shalt.err (!%p757_p12)
}
  0x3c   :  { %s761_s21 = scalar_lea.vmem %s877_s27, 1024  ;;  %p766_p0 = scmp.lt.s32.totalorder %s877_s27, %s877_s27 }
  0x3d   :  { %p762_p13 = scmp.ne.s32.totalorder %s877_s27, %s761_s21  ;;  %p767_p1 = scmp.lt.s32.totalorder %s761_s21, %s761_s21 }
  0x3f   :  { %p768_p2 = por %p767_p1, %p766_p0 }
  0x41   :  { %p769_p3 = pnand %p768_p2, %p762_p13 }
  0x43   :  { %772 = shalt.err (!%p769_p3)
}
  0x44   :  { %62 = dma.hbm_to_vmem [thread:$0]  %s980_s3, 1024, %s877_s27, [#allocation9], %s804_s7, %s804_s7, %s805_s8  }
  0x45   :  { %795 = dma.done.wait [#allocation3], 256  }
  0x46   :  { %796 = vsyncadd [#allocation3], 4294967040 }
  0x47   :  { %797 = dma.done.wait [#allocation6], 2048  }
  0x48   :  { %798 = vsyncadd [#allocation6], 4294965248 }
  0x49   :  { %799 = dma.done.wait [#allocation9], 1024  }
  0x4a   :  { %800 = vsyncadd [#allocation9], 4294966272  ;;  %v811_v0 = vmov 0.0   ;;  %vm812_vm0 = vmmov 0   ;;  %v649_v1 = vld [vmem:[#allocation5] sm:$0xff]   ;;  %v650_v2 = vld [vmem:[#allocation5 + $0x8] sm:$0xff]  }
  0x4b   :  { %575 = vmatprep.subr.bf16.mxu0 %v811_v0  ;;  %591 = vmatprep.mubr.msk.bf16.mxu0 %vm812_vm0, %v811_v0  ;;  %v651_v3 = vld [vmem:[#allocation5 + $0x10] sm:$0xff]   ;;  %v657_v4 = vld [vmem:[#allocation7] sm:$0xff]   ;;  %v652_v5 = vld [vmem:[#allocation5 + $0x18] sm:$0xff]   ;;  %vm497_vm1 = vcmask 1041409  }
  0x4c   :  { %595 = vmatprep.subr.bf16.mxu1 %v811_v0  ;;  %611 = vmatprep.mubr.msk.bf16.mxu1 %vm812_vm0, %v811_v0  ;;  %v658_v6 = vld [vmem:[#allocation7 + $0x8] sm:$0xff]   ;;  %v653_v7 = vld [vmem:[#allocation5 + $0x20] sm:$0xff]   ;;  %v659_v8 = vld [vmem:[#allocation7 + $0x10] sm:$0xff]  }
  0x4d   :  { %576 = vmatpush3.bf16.msra.mxu0 %v649_v1  ;;  %596 = vmatpush3.bf16.msra.mxu1 %v657_v4  ;;  %v654_v9 = vld [vmem:[#allocation5 + $0x28] sm:$0xff]   ;;  %v660_v10 = vld [vmem:[#allocation7 + $0x18] sm:$0xff]   ;;  %v655_v11 = vld [vmem:[#allocation5 + $0x30] sm:$0xff]  }
  0x4e   :  { %577 = vmatprep.subr.bf16.mxu0 %v811_v0  ;;  %597 = vmatprep.subr.bf16.mxu1 %v811_v0  ;;  %v656_v12 = vld [vmem:[#allocation5 + $0x38] sm:$0xff]   ;;  %v86_v13 = vld [vmem:[#allocation2] sm:$0xff]  ;;  %v661_v16 = vld [vmem:[#allocation7 + $0x20] sm:$0xff]  }
  0x4f   :  { %v87_v14 = vld [vmem:[#allocation2 + $0x8] sm:$0xff]  ;;  %v662_v17 = vld [vmem:[#allocation7 + $0x28] sm:$0xff]   ;;  %v663_v18 = vld [vmem:[#allocation7 + $0x30] sm:$0xff]  }
  0x50   :  { %v88_v15 = vpack.c.bf16 %v87_v14, %v86_v13  ;;  %v664_v19 = vld [vmem:[#allocation7 + $0x38] sm:$0xff]   ;;  %v665_v20 = vld [vmem:[#allocation8] sm:$0xff]   ;;  %v666_v21 = vld [vmem:[#allocation8 + $0x8] sm:$0xff]  }
  0x51   :  { %578 = vmatpush3.bf16.msra.mxu0 %v650_v2  ;;  %598 = vmatpush3.bf16.msra.mxu1 %v658_v6  ;;  %v667_v22 = vld [vmem:[#allocation8 + $0x10] sm:$0xff]   ;;  %v668_v23 = vld [vmem:[#allocation8 + $0x18] sm:$0xff]   ;;  %v669_v34 = vld [vmem:[#allocation8 + $0x20] sm:$0xff]   ;;  %v813_v2 = vmov 0  }
  0x52   :  { %579 = vmatprep.subr.bf16.mxu0 %v811_v0  ;;  %599 = vmatprep.subr.bf16.mxu1 %v811_v0  ;;  %v518_v24 = vld [vmem:[%s982_s5] ss:$0 sm:$0xff]  ;;  %v670_v35 = vld [vmem:[#allocation8 + $0x28] sm:$0xff]   ;;  %v672_v37 = vld [vmem:[#allocation8 + $0x38] sm:$0xff]  }
  0x53   :  { %v671_v36 = vld [vmem:[#allocation8 + $0x30] sm:$0xff]   ;;  %647 = vset.pattern.permute.xlu0 %v813_v2  ;;  %648 = vset.pattern.permute.xlu1 %v813_v2 }
  0x54   :  { %v527_v38 = vld [vmem:[%s982_s5 + $0x1] ss:$0 sm:$0xff]  ;;  %v536_v50 = vld [vmem:[%s982_s5 + $0x2] ss:$0 sm:$0xff]  ;;  %v545_v55 = vld [vmem:[%s982_s5 + $0x3] ss:$0 sm:$0xff] }
  0x55   :  { %580 = vmatpush3.bf16.msra.mxu0 %v651_v3  ;;  %600 = vmatpush3.bf16.msra.mxu1 %v659_v8 }
  0x56   :  { %581 = vmatprep.subr.bf16.mxu0 %v811_v0  ;;  %601 = vmatprep.subr.bf16.mxu1 %v811_v0 }
  0x59   :  { %582 = vmatpush3.bf16.msra.mxu0 %v652_v5  ;;  %602 = vmatpush3.bf16.msra.mxu1 %v660_v10 }
  0x5a   :  { %583 = vmatprep.subr.bf16.mxu0 %v811_v0  ;;  %603 = vmatprep.subr.bf16.mxu1 %v811_v0 }
  0x5d   :  { %584 = vmatpush3.bf16.msra.mxu0 %v653_v7  ;;  %604 = vmatpush3.bf16.msra.mxu1 %v661_v16 }
  0x5e   :  { %585 = vmatprep.subr.bf16.mxu0 %v811_v0  ;;  %605 = vmatprep.subr.bf16.mxu1 %v811_v0 }
  0x61   :  { %586 = vmatpush3.bf16.msra.mxu0 %v654_v9  ;;  %606 = vmatpush3.bf16.msra.mxu1 %v662_v17  ;;  %v546_v9 = vld [vmem:[%s982_s5 + $0x5] ss:$0 sm:$0xff] }
  0x62   :  { %587 = vmatprep.subr.bf16.mxu0 %v811_v0  ;;  %607 = vmatprep.subr.bf16.mxu1 %v811_v0 }
  0x65   :  { %588 = vmatpush3.bf16.msra.mxu0 %v655_v11  ;;  %608 = vmatpush3.bf16.msra.mxu1 %v663_v18 }
  0x66   :  { %589 = vmatprep.subr.bf16.mxu0 %v811_v0  ;;  %609 = vmatprep.subr.bf16.mxu1 %v811_v0 }
  0x69   :  { %590 = vmatpush3.bf16.msra.mxu0 %v656_v12  ;;  %610 = vmatpush3.bf16.msra.mxu1 %v664_v19 }
  0x6a   :  { %615 = vmatprep.subr.bf16.mxu0 %v811_v0 }
  0x6c   :  { %592 = vmatmul.mubr.bf16.vlgmr.msra.gmra.mrb[0].mxu0 %v88_v15 }
  0x6d   :  { %631 = vmatprep.mubr.msk.bf16.mxu0 %vm812_vm0, %v811_v0  ;;  %616 = vmatpush3.bf16.msra.mxu0 %v665_v20  ;;  %v463_v20 = vld [vmem:[%s981_s4] sm:$0xff]  ;;  %s814_s4 = smov [#allocation10]  }
  0x6e   :  { %617 = vmatprep.subr.bf16.mxu0 %v811_v0  ;;  %s507_s13 = sshll.u32 %s814_s4, 4  ;;  %s508_s13 = int_to_ptr.vmem [resolvable:$true] %s507_s13 }
  0x6f   :  { %s773_s0 = scalar_lea.vmem %s508_s13, 32  ;;  %p778_p5 = scmp.lt.s32.totalorder %s508_s13, %s508_s13 }
  0x70   :  { %p774_p4 = scmp.ne.s32.totalorder %s508_s13, %s773_s0  ;;  %p779_p6 = scmp.lt.s32.totalorder %s773_s0, %s773_s0 }
  0x71   :  { %618 = vmatpush3.bf16.msra.mxu0 %v666_v21 }
  0x72   :  { %619 = vmatprep.subr.bf16.mxu0 %v811_v0  ;;  %p780_p7 = por %p779_p6, %p778_p5 }
  0x74   :  { %p781_p8 = pnand %p780_p7, %p774_p4 }
  0x75   :  { %620 = vmatpush3.bf16.msra.mxu0 %v667_v22 }
  0x76   :  { %621 = vmatprep.subr.bf16.mxu0 %v811_v0 }
  0x79   :  { %622 = vmatpush3.bf16.msra.mxu0 %v668_v23 }
  0x7a   :  { %623 = vmatprep.subr.bf16.mxu0 %v811_v0 }
  0x7d   :  { %624 = vmatpush3.bf16.msra.mxu0 %v669_v34 }
  0x7e   :  { %625 = vmatprep.subr.bf16.mxu0 %v811_v0 }
  0x81   :  { %626 = vmatpush3.bf16.msra.mxu0 %v670_v35 }
  0x82   :  { %627 = vmatprep.subr.bf16.mxu0 %v811_v0 }
  0x85   :  { %628 = vmatpush3.bf16.msra.mxu0 %v671_v36 }
  0x86   :  { %629 = vmatprep.subr.bf16.mxu0 %v811_v0 }
  0x89   :  { %630 = vmatpush3.bf16.msra.mxu0 %v672_v37 }
 0x13f   :  { %v191_v25 = vpop.f32.mrb[0].mxu0 }
 0x140   :  { %v192_v26 = vadd.f32 %v518_v24, %v191_v25  ;;  %v593_v27 = vpop.f32.mrb[1].mxu0 }
 0x141   :  { %v194_v28 = vpop.f32.mrb[2].mxu0 }
 0x142   :  { %v195_v29 = vadd.f32 %v518_v24, %v194_v28  ;;  %v594_v30 = vpop.f32.mrb[3].mxu0  ;;  %673 = vtanh.f32 %v192_v26 }
 0x144   :  { %675 = vtanh.f32 %v195_v29 }
 0x14c   :  { %v674_v31 = vpop.eup %673 }
 0x14e   :  { %v676_v32 = vpop.eup %675 }
 0x14f   :  { %v200_v33 = vpack.c.bf16 %v676_v32, %v674_v31 }
 0x151   :  { %612 = vmatmul.mubr.bf16.vlgmr.msra.gmra.mrb[0].mxu1 %v200_v33  ;;  %v547_v33 = vld [vmem:[%s982_s5 + $0x4] ss:$0 sm:$0xff] }
 0x224   :  { %v303_v39 = vpop.f32.mrb[0].mxu1 }
 0x225   :  { %v304_v40 = vadd.f32 %v527_v38, %v303_v39  ;;  %v613_v41 = vpop.f32.mrb[1].mxu1 }
 0x226   :  { %v306_v42 = vpop.f32.mrb[2].mxu1 }
 0x227   :  { %v307_v43 = vadd.f32 %v527_v38, %v306_v42  ;;  %v614_v44 = vpop.f32.mrb[3].mxu1  ;;  %677 = vtanh.f32 %v304_v40 }
 0x229   :  { %679 = vtanh.f32 %v307_v43 }
 0x231   :  { %v678_v45 = vpop.eup %677 }
 0x233   :  { %v680_v46 = vpop.eup %679 }
 0x234   :  { %v312_v47 = vpack.c.bf16 %v680_v46, %v678_v45 }
 0x236   :  { %632 = vmatmul.mubr.bf16.vlgmr.msra.gmra.mrb[4].mxu0 %v312_v47 }
 0x309   :  { %v415_v48 = vpop.f32.mrb[4].mxu0 }
 0x30a   :  { %v633_v49 = vpop.f32.mrb[5].mxu0  ;;  %v416_v54 = vadd.f32 %v536_v50, %v415_v48 }
 0x30b   :  { %v418_v51 = vpop.f32.mrb[6].mxu0 }
 0x30c   :  { %v419_v52 = vadd.f32 %v536_v50, %v418_v51  ;;  %v634_v53 = vpop.f32.mrb[7].mxu0  ;;  %v443_v1 = vmul.f32 %v545_v55, %v416_v54 }
 0x30e   :  { %424 = vadd.xlane.f32.xlu0 %v419_v52  ;;  %v444_v56 = vmul.f32 %v545_v55, %v419_v52 }
 0x312   :  { %422 = vadd.xlane.f32.xlu0 %v416_v54 }
 0x316   :  { %447 = vadd.xlane.f32.xlu0 %v444_v56 }
 0x39b   :  { %v425_v57 = vpop.xlane.xlu0 %424 }
 0x39c   :  { %v428_v58 = vmul.f32 0.0078125, %v425_v57 }
 0x39e   :  { %v430_v59 = vsub.f32 %v419_v52, %v428_v58  ;;  %v454_v11 = vmul.f32 %v546_v9, %v428_v58 }
 0x39f   :  { %v423_v60 = vpop.xlane.xlu0 %422 }
 0x3a0   :  { %v427_v61 = vmul.f32 0.0078125, %v423_v60  ;;  %v432_v62 = vmul.f32 %v430_v59, %v430_v59 }
 0x3a2   :  { %435 = vadd.xlane.f32.xlu1 %v432_v62  ;;  %v429_v63 = vsub.f32 %v416_v54, %v427_v61  ;;  %v453_v15 = vmul.f32 %v546_v9, %v427_v61 }
 0x3a3   :  { %v448_v10 = vpop.xlane.xlu0 %447 }
 0x3a4   :  { %v431_v0 = vmul.f32 %v429_v63, %v429_v63  ;;  %v456_v12 = vsub.f32 %v448_v10, %v454_v11 }
 0x3a6   :  { %433 = vadd.xlane.f32.xlu1 %v431_v0 }
 0x3aa   :  { %445 = vadd.xlane.f32.xlu1 %v443_v1 }
 0x42f   :  { %v436_v3 = vpop.xlane.xlu1 %435 }
 0x430   :  { %v438_v4 = vmul.f32 0.0078125, %v436_v3 }
 0x432   :  { %v458_v5 = vadd.f32 1e-06, %v438_v4 }
 0x433   :  { %v434_v6 = vpop.xlane.xlu1 %433 }
 0x434   :  { %681 = vrsqrt.f32 %v458_v5  ;;  %v437_v7 = vmul.f32 0.0078125, %v434_v6 }
 0x436   :  { %v457_v8 = vadd.f32 1e-06, %v437_v7 }
 0x437   :  { %v446_v14 = vpop.xlane.xlu1 %445 }
 0x438   :  { %683 = vrsqrt.f32 %v457_v8  ;;  %v455_v17 = vsub.f32 %v446_v14, %v453_v15 }
 0x43e   :  { %v682_v13 = vpop.eup %681 }
 0x43f   :  { %v462_v16 = vmul.f32 %v682_v13, %v456_v12 }
 0x441   :  { %471 = vperm.xlu0 %647, %v462_v16  }
 0x442   :  { %v684_v18 = vpop.eup %683 }
 0x443   :  { %v461_v19 = vmul.f32 %v684_v18, %v455_v17 }
 0x445   :  { %466 = vperm.xlu1 %648, %v461_v19  }
 0x4c0   :  { %v472_v21 = vpop.permute.xlu0 %471 }
 0x4c1   :  { %v475_v22 = vmul.f32 %v472_v21, %v463_v20 }
 0x4c3   :  { %v482_v23 = vrot.slane %v475_v22, 4 }
 0x4c4   :  { %v467_v24 = vpop.permute.xlu1 %466 }
 0x4c5   :  { %v483_v25 = vadd.f32 %v482_v23, %v475_v22  ;;  %v474_v26 = vmul.f32 %v467_v24, %v463_v20 }
 0x4c7   :  { %v484_v27 = vrot.slane %v483_v25, 2  ;;  %v476_v28 = vrot.slane %v474_v26, 4 }
 0x4c9   :  { %v485_v29 = vadd.f32 %v484_v27, %v483_v25  ;;  %v477_v30 = vadd.f32 %v476_v28, %v474_v26 }
 0x4cb   :  { %v486_v31 = vrot.slane %v485_v29, 1  ;;  %v478_v32 = vrot.slane %v477_v30, 2 }
 0x4cd   :  { %v487_v34 = vadd.f32 %v486_v31, %v485_v29  ;;  %v479_v35 = vadd.f32 %v478_v32, %v477_v30 }
 0x4cf   :  { %v480_v36 = vrot.slane %v479_v35, 1  ;;  %v493_v37 = vadd.f32 %v547_v33, %v487_v34 }
 0x4d1   :  { %v481_v38 = vadd.f32 %v480_v36, %v479_v35  ;;  %v496_v40 = vrot.slane %v493_v37, 7 }
 0x4d3   :  { %v492_v39 = vadd.f32 %v547_v33, %v481_v38 }
 0x4d5   :  { %v498_v41 = vsel %vm497_vm1, %v496_v40, %v492_v39 }
 0x4d6   :  { %500 = vst [vmem:[#allocation10] sm:$0x3] %v498_v41 }
 0x4d7   :  { %784 = shalt.err (!%p781_p8)
}
 0x4d8   :  { %s785_s14 = scalar_lea.hbm %s983_s6, 32 }
 0x4d9   :  { %p786_p9 = scmp.ne.s32.totalorder %s983_s6, %s785_s14  ;;  %p789_p10 = scmp.lt.u32.totalorder %s785_s14, %s983_s6 }
 0x4db   :  { %p791_p11 = pnand %p789_p10, %p786_p9 }
 0x4dd   :  { %794 = shalt.err (!%p791_p11)
}
 0x4de   :  { %510 = dma.vmem_to_hbm [thread:$0]  %s508_s13, 32, %s983_s6, [#allocation4]  }
 0x4df   :  { %801 = dma.done.wait [#allocation4], 32  }
 0x4e0   :  { %802 = vsyncadd [#allocation4], 4294967264 }
 0x4e1   :  { %514 = vsyncpa [#allocation3], 1 }
 0x4e2   :  { %515 = vsyncpa [#allocation6], 1 }
 0x4e3   :  { %516 = vsyncpa [#allocation9], 1 }
 0x4e4   :  { %517 = vsyncpa [#allocation4], 1 }

</bundles_post_ra>
